<compile_context>
chip_gen: v7x
topology: tpu7x:2x2x1
jax: 0.10.0
libtpu: 0.0.40
codegen_flags: <defaults>
</compile_context>

<pallas_src>
import functools

import jax
import jax.numpy as jnp
from jax.experimental import pallas as pl
from jax.experimental.pallas import tpu as pltpu


def plsigmoid_kernel(beta_ref, slope_ref, x_ref, o_ref):
    beta = beta_ref[...]        # (TR, 1)
    slope = slope_ref[...]      # (TR, 1)
    x = x_ref[...]              # (TR, TL)
    z = slope * x
    # Exact sigmoid: kernel is HBM-bound, exp + divide on the EUP are free.
    sig = 1.0 / (1.0 + jnp.exp(-z))
    o_ref[...] = (beta * sig).astype(o_ref.dtype)


def _largest_divisor_tile(extent, unit, cap):
    """Largest multiple of `unit` that divides `extent` exactly and is <= cap.

    Falls back to the full extent when `extent` is not a multiple of `unit`
    (a full-extent block is always legal), so no padding is ever needed.
    """
    if extent <= unit or extent % unit != 0:
        return int(extent)
    cap = max(unit, (int(cap) // unit) * unit)
    best = unit
    t = unit
    hi = min(cap, extent)
    while t <= hi:
        if extent % t == 0:
            best = t
        t += unit
    return int(best)


@functools.partial(jax.jit, static_argnames=("target_block_bytes",))
def plsigmoid(x, beta, slope, *, target_block_bytes=4 * 1024 * 1024):
    B, C, L = x.shape
    R = B * C
    itemsize = x.dtype.itemsize

    # Flatten to a 2D (rows, lanes) view; reshape of a contiguous array is free.
    x2 = x.reshape(R, L)
    # Tile per-channel params across the batch: (C,1) -> (B*C,1), a few KB.
    beta_r = jnp.broadcast_to(jnp.reshape(beta, (1, C, 1)), (B, C, 1)).reshape(R, 1)
    slope_r = jnp.broadcast_to(jnp.reshape(slope, (1, C, 1)), (B, C, 1)).reshape(R, 1)

    # Lane tile: as wide as possible (multiple of 128 dividing L), capped so the
    # minimum 8-row block stays within the target block size.
    tl_cap = max(128, target_block_bytes // (8 * itemsize))
    tl = _largest_divisor_tile(L, 128, tl_cap)
    # Row tile: multiple of 8 dividing R, sized so TR*TL*itemsize ~ target.
    tr_cap = max(8, target_block_bytes // (tl * itemsize))
    tr = _largest_divisor_tile(R, 8, tr_cap)

    # v7x has 2 TensorCores: if everything fits in one block, split the row
    # axis in two so both cores (and both halves of the HBM bandwidth) work.
    if tr == R and tl == L and R % 16 == 0:
        tr = R // 2

    grid = (pl.cdiv(R, tr), pl.cdiv(L, tl))  # exact divisors -> no ragged blocks

    n = B * C * L
    cost = pl.CostEstimate(
        flops=4 * n,                 # mul, add, div, mul
        transcendentals=n,           # exp
        bytes_accessed=2 * n * itemsize + 2 * R * beta_r.dtype.itemsize,
    )

    out2 = pl.pallas_call(
        plsigmoid_kernel,
        out_shape=jax.ShapeDtypeStruct((R, L), x.dtype),
        grid=grid,
        in_specs=[
            pl.BlockSpec((tr, 1), lambda r, l: (r, 0)),    # beta rows for this tile
            pl.BlockSpec((tr, 1), lambda r, l: (r, 0)),    # slope rows for this tile
            pl.BlockSpec((tr, tl), lambda r, l: (r, l)),   # x tile
        ],
        out_specs=pl.BlockSpec((tr, tl), lambda r, l: (r, l)),
        compiler_params=pltpu.CompilerParams(
            dimension_semantics=("parallel", "parallel"),
            # ~16 MiB double-buffered footprint at the default 4 MiB blocks;
            # explicit limit keeps v5e (16 MiB scoped default) happy and stays
            # well under v7x's 64 MiB physical VMEM.
            vmem_limit_bytes=32 * 1024 * 1024,
        ),
        cost_estimate=cost,
    )(beta_r, slope_r, x2)

    return out2.reshape(B, C, L)


if __name__ == "__main__":
    key = jax.random.PRNGKey(0)

    # --- small test shape matching the module (batch=2, in_features=4, L=16) ---
    B, C, L = 2, 4, 16
    x = jax.random.normal(key, (B, C, L), dtype=jnp.float32)
    # nn.Parameter init from __init__: beta = ones(C,1)*2, slope = ones(C,1)
    beta = jnp.ones((C, 1), dtype=jnp.float32) * 2.0
    slope = jnp.ones((C, 1), dtype=jnp.float32)

    out = plsigmoid(x, beta, slope)
    jax.block_until_ready(out)

    ref = beta * jax.nn.sigmoid(slope * x)
    assert out.shape == x.shape
    assert jnp.allclose(out, ref, atol=1e-5, rtol=1e-5)

    # --- second check exercising the multi-block tiled path (tiny block target) ---
    x2 = jax.random.normal(jax.random.PRNGKey(0), (4, 8, 256), dtype=jnp.float32)
    beta2 = jnp.ones((8, 1), dtype=jnp.float32) * 2.0
    slope2 = jnp.full((8, 1), 0.5, dtype=jnp.float32)
    out2 = plsigmoid(x2, beta2, slope2, target_block_bytes=8 * 1024)
    jax.block_until_ready(out2)
    ref2 = beta2 * jax.nn.sigmoid(slope2 * x2)
    assert out2.shape == x2.shape
    assert jnp.allclose(out2, ref2, atol=1e-5, rtol=1e-5)

    print("KERNEL_OK")
</pallas_src>

<mosaic_0001>
module attributes {stable_mosaic.version = 11 : i64} {
  func.func @plsigmoid_kernel(%arg0: i32, %arg1: i32, %arg2: memref<8x1xf32, #tpu.memory_space<vmem>>, %arg3: memref<8x1xf32, #tpu.memory_space<vmem>>, %arg4: memref<8x16xf32, #tpu.memory_space<vmem>>, %arg5: memref<8x16xf32, #tpu.memory_space<vmem>>) attributes {dimension_semantics = [#tpu.dimension_semantics<parallel>, #tpu.dimension_semantics<parallel>], iteration_bounds = array<i64: 1, 1>, scalar_prefetch = 0 : i64, scratch_operands = 0 : i64, tpu.core_type = #tpu.core_type<tc>, window_params = [{transform_indices = @transform_0, window_bounds = array<i64: 8, 1>}, {transform_indices = @transform_1, window_bounds = array<i64: 8, 1>}, {transform_indices = @transform_2, window_bounds = array<i64: 8, 16>}, {transform_indices = @transform_3, window_bounds = array<i64: 8, 16>}]} {
    %c0 = arith.constant 0 : index
    %c0_0 = arith.constant 0 : index
    %0 = vector.load %arg2[%c0, %c0_0] : memref<8x1xf32, #tpu.memory_space<vmem>>, vector<8x1xf32>
    %c0_1 = arith.constant 0 : index
    %c0_2 = arith.constant 0 : index
    %1 = vector.load %arg3[%c0_1, %c0_2] : memref<8x1xf32, #tpu.memory_space<vmem>>, vector<8x1xf32>
    %c0_3 = arith.constant 0 : index
    %c0_4 = arith.constant 0 : index
    %2 = vector.load %arg4[%c0_3, %c0_4] : memref<8x16xf32, #tpu.memory_space<vmem>>, vector<8x16xf32>
    %3 = vector.broadcast %1 : vector<8x1xf32> to vector<8x16xf32>
    %4 = arith.mulf %3, %2 : vector<8x16xf32>
    %cst = arith.constant 0.000000e+00 : f32
    %5 = vector.broadcast %cst : f32 to vector<8x16xf32>
    %6 = arith.subf %5, %4 : vector<8x16xf32>
    %7 = math.exp %6 : vector<8x16xf32>
    %cst_5 = arith.constant 1.000000e+00 : f32
    %8 = vector.broadcast %cst_5 : f32 to vector<8x16xf32>
    %9 = arith.addf %8, %7 : vector<8x16xf32>
    %cst_6 = arith.constant 1.000000e+00 : f32
    %10 = vector.broadcast %cst_6 : f32 to vector<8x16xf32>
    %11 = arith.divf %10, %9 : vector<8x16xf32>
    %12 = vector.broadcast %0 : vector<8x1xf32> to vector<8x16xf32>
    %13 = arith.mulf %12, %11 : vector<8x16xf32>
    %c0_7 = arith.constant 0 : index
    %c0_8 = arith.constant 0 : index
    %14 = vector.load %arg5[%c0_7, %c0_8] : memref<8x16xf32, #tpu.memory_space<vmem>>, vector<8x16xf32>
    tpu.vector_store %arg5[%c0_7, %c0_8], %13 {strides = array<i32>} : memref<8x16xf32, #tpu.memory_space<vmem>>, vector<8x16xf32>,
    return
  }
  func.func @transform_0(%arg0: i32, %arg1: i32) -> (i32, i32) {
    %c0_i32 = arith.constant 0 : i32
    %c0_i32_0 = arith.constant 0 : i32
    return %arg0, %c0_i32 : i32, i32
  }
  func.func @transform_1(%arg0: i32, %arg1: i32) -> (i32, i32) {
    %c0_i32 = arith.constant 0 : i32
    %c0_i32_0 = arith.constant 0 : i32
    return %arg0, %c0_i32 : i32, i32
  }
  func.func @transform_2(%arg0: i32, %arg1: i32) -> (i32, i32) {
    %c0_i32 = arith.constant 0 : i32
    return %arg0, %arg1 : i32, i32
  }
  func.func @transform_3(%arg0: i32, %arg1: i32) -> (i32, i32) {
    %c0_i32 = arith.constant 0 : i32
    return %arg0, %arg1 : i32, i32
  }
}

</mosaic_0001>

<bundles_post_ra>
// kernel: plsigmoid.1
= control target key start
LH: loop header
LB: loop body
LE: loop exit
PB: predicated region body
PF: predicated region fallthrough
CT: control target
= control target key end

     0   :  { %v83_v1 = vmov 0   ;;  %s126_s0 = inlined_call_operand.vmem [shape: f32[8,1], index: 0, kind: input, shape index: {}]   ;;  %s127_s1 = inlined_call_operand.vmem [shape: f32[8,1], index: 1, kind: input, shape index: {}]   ;;  %s128_s2 = inlined_call_operand.vmem [shape: f32[8,16], index: 2, kind: input, shape index: {}]   ;;  %s129_s3 = inlined_call_operand.hbm [shape: f32[8,16], index: 3, kind: output, shape index: {}]  }
   0x1   :  { %v16_v0 = vld [vmem:[%s127_s1] sm:$0xff]  ;;  %54 = vset.pattern.permute.xlu0 %v83_v1 }
   0x2   :  { %8 = vsyncpa [#allocation3], 0  ;;  %20 = vperm.xlu0 %54, %v16_v0   ;;  %v15_v2 = vld [vmem:[%s126_s0] sm:$0xff]  ;;  %s84_s1 = smov [#allocation2]   ;;  %vm36_vm0 = vcmask 130048  }
   0x3   :  { %v17_v3 = vld [vmem:[%s128_s2] sm:$0xff]  ;;  %s44_s18 = sshll.u32 %s84_s1, 4  ;;  %s45_s18 = int_to_ptr.vmem [resolvable:$true] %s44_s18 }
   0x4   :  { %s59_s0 = scalar_lea.vmem %s45_s18, 128  ;;  %p64_p1 = scmp.lt.s32.totalorder %s45_s18, %s45_s18 }
   0x5   :  { %p60_p0 = scmp.ne.s32.totalorder %s45_s18, %s59_s0  ;;  %p65_p2 = scmp.lt.s32.totalorder %s59_s0, %s59_s0 }
   0x6   :  { %32 = vperm.xlu0 %54, %v15_v2  }
   0x7   :  { %p66_p3 = por %p65_p2, %p64_p1 }
   0x9   :  { %p67_p4 = pnand %p66_p3, %p60_p0 }
  0x81   :  { %v21_v4 = vpop.permute.xlu0 %20 }
  0x82   :  { %v23_v5 = vmul.f32 %v21_v4, %v17_v3 }
  0x84   :  { %v24_v6 = vsub.f32 0.0, %v23_v5 }
  0x85   :  { %v33_v11 = vpop.permute.xlu0 %32 }
  0x86   :  { %v25_v7 = vmul.f32 1.442695, %v24_v6 }
  0x88   :  { %55 = vpow2.f32 %v25_v7 }
  0x92   :  { %v56_v8 = vpop.eup %55 }
  0x93   :  { %v27_v9 = vadd.f32 1.0, %v56_v8 }
  0x95   :  { %57 = vrcp.f32 %v27_v9 }
  0x9f   :  { %v58_v10 = vpop.eup %57 }
  0xa0   :  { %v35_v12 = vmul.f32 %v58_v10, %v33_v11 }
  0xa2   :  { %37 = vst.msk [vmem:[#allocation2] sm:$0xff] %vm36_vm0, %v35_v12 }
  0xa3   :  { %70 = shalt.err (!%p67_p4)
}
  0xa4   :  { %s71_s20 = scalar_lea.hbm %s129_s3, 128 }
  0xa5   :  { %p72_p5 = scmp.ne.s32.totalorder %s129_s3, %s71_s20  ;;  %p75_p6 = scmp.lt.u32.totalorder %s71_s20, %s129_s3 }
  0xa7   :  { %p77_p7 = pnand %p75_p6, %p72_p5 }
  0xa9   :  { %80 = shalt.err (!%p77_p7)
}
  0xaa   :  { %47 = dma.vmem_to_hbm [thread:$0]  %s45_s18, 128, %s129_s3, [#allocation3]  }
  0xab   :  { %81 = dma.done.wait [#allocation3], 128  }
  0xac   :  { %82 = vsyncadd [#allocation3], 4294967168 }
  0xad   :  { %51 = vsyncpa [#allocation3], 1 }

</bundles_post_ra>
